<compile_context>
chip_gen: v7x
topology: tpu7x:2x2x1
jax: 0.10.0
libtpu: 0.0.40
codegen_flags: <defaults>
</compile_context>

<pallas_src>
import math
import functools

import jax
import jax.numpy as jnp
from jax.experimental import pallas as pl
from jax.experimental.pallas import tpu as pltpu


def _gather_embed_kernel(ids_ref, tbl_ref, out_ref, buf, sem, *, tm, scale):
    """One grid step: DMA-gather `tm` table rows, scale, write out.

    ids_ref : SMEM int32 (N_pad,)        -- scalar-prefetched token ids
    tbl_ref : ANY/HBM   (vocab, d_model) -- embedding table (never in VMEM)
    out_ref : VMEM      (tm, d_model)    -- output block for this step
    buf     : VMEM      (tm, d_model)    -- gather landing buffer
    sem     : DMA semaphore              -- shared by all tm row copies
    """
    base = pl.program_id(0) * tm

    # Issue all `tm` row-gather DMAs; they all signal the same semaphore.
    @pl.loop(0, tm)
    def _issue(t):
        row = ids_ref[base + t]
        pltpu.make_async_copy(
            tbl_ref.at[pl.ds(row, 1), :],   # (1, d_model) row in HBM
            buf.at[pl.ds(t, 1), :],         # (1, d_model) row in VMEM
            sem,
        ).start()

    # Wait once per issued copy (all transfers are equal-sized, so completion
    # order does not matter).
    @pl.loop(0, tm)
    def _wait(t):
        pltpu.make_async_copy(
            tbl_ref.at[pl.ds(0, 1), :],     # placeholder src of matching shape
            buf.at[pl.ds(t, 1), :],
            sem,
        ).wait()

    out_ref[...] = (buf[...].astype(jnp.float32) * scale).astype(out_ref.dtype)


def _round_up(x, m):
    return ((x + m - 1) // m) * m


def normalized_embedding(ids, table, *, tm=256):
    """ids: int array (B, T); table: (vocab, d_model). Returns (B, T, d_model)."""
    B, T = ids.shape
    vocab, d_model = table.shape
    N = B * T

    # Token tile: multiple of 8 (sublane), capped by the (padded) token count.
    tm_eff = min(tm, _round_up(N, 8))
    tm_eff = _round_up(tm_eff, 8)
    n_pad = _round_up(N, tm_eff)
    grid = n_pad // tm_eff

    # Flatten, cast ("x.long()"), clamp (avoid OOB DMA), pad to a tile multiple.
    ids_flat = jnp.clip(ids.reshape(-1).astype(jnp.int32), 0, vocab - 1)
    if n_pad != N:
        ids_flat = jnp.pad(ids_flat, (0, n_pad - N))

    scale = float(math.sqrt(d_model))
    kernel = functools.partial(_gather_embed_kernel, tm=tm_eff, scale=scale)

    out_flat = pl.pallas_call(
        kernel,
        out_shape=jax.ShapeDtypeStruct((n_pad, d_model), table.dtype),
        grid_spec=pltpu.PrefetchScalarGridSpec(
            num_scalar_prefetch=1,                         # ids -> SMEM
            grid=(grid,),
            in_specs=[pl.BlockSpec(memory_space=pl.ANY)],  # table stays in HBM
            out_specs=pl.BlockSpec((tm_eff, d_model), lambda i, ids: (i, 0)),
            scratch_shapes=[
                pltpu.VMEM((tm_eff, d_model), table.dtype),
                pltpu.SemaphoreType.DMA,
            ],
        ),
        compiler_params=pltpu.CompilerParams(
            dimension_semantics=("parallel",)),
    )(ids_flat, table)

    return out_flat[:N].reshape(B, T, d_model)


if __name__ == "__main__":
    # Small shapes consistent with NormalizedEmbedding(d_model, vocab).
    d_model = 32
    vocab = 64
    B, T = 2, 8

    key = jax.random.PRNGKey(0)
    k_tbl, k_ids = jax.random.split(key)

    # nn.Embedding default init: weight ~ N(0, 1)
    table = jax.random.normal(k_tbl, (vocab, d_model), dtype=jnp.float32)
    ids = jax.random.randint(k_ids, (B, T), 0, vocab, dtype=jnp.int32)

    out = normalized_embedding(ids, table)
    out = jax.block_until_ready(out)

    ref = table[ids] * math.sqrt(d_model)
    assert out.shape == (B, T, d_model)
    assert jnp.allclose(out, ref, atol=1e-5, rtol=1e-5), "mismatch vs reference"

    # Also exercise the non-multiple-of-8 padding path.
    ids2 = jax.random.randint(jax.random.PRNGKey(1), (3, 5), 0, vocab, jnp.int32)
    out2 = jax.block_until_ready(normalized_embedding(ids2, table))
    ref2 = table[ids2] * math.sqrt(d_model)
    assert jnp.allclose(out2, ref2, atol=1e-5, rtol=1e-5), "mismatch (padded case)"

    print("KERNEL_OK")
</pallas_src>

<mosaic_0001>
module attributes {stable_mosaic.version = 11 : i64} {
  func.func @_gather_embed_kernel(%arg0: i32, %arg1: memref<16xi32, #tpu.memory_space<smem>>, %arg2: memref<64x32xf32, #tpu.memory_space<any>>, %arg3: memref<16x32xf32, #tpu.memory_space<vmem>>, %arg4: memref<16x32xf32, #tpu.memory_space<vmem>>, %arg5: memref<!tpu.dma_semaphore, #tpu.memory_space<semaphore_mem>>) attributes {dimension_semantics = [#tpu.dimension_semantics<parallel>], iteration_bounds = array<i64: 1>, scalar_prefetch = 1 : i64, scratch_operands = 2 : i64, tpu.core_type = #tpu.core_type<tc>, window_params = [{}, {transform_indices = @transform_1, window_bounds = array<i64: 16, 32>}]} {
    %c16_i32 = arith.constant 16 : i32
    %0 = arith.muli %arg0, %c16_i32 : i32
    %c0_i32 = arith.constant 0 : i32
    %c16_i32_0 = arith.constant 16 : i32
    %1 = arith.addi %c0_i32, %c16_i32_0 : i32
    %c1_i32 = arith.constant 1 : i32
    scf.for %arg6 = %c0_i32 to %1 step %c1_i32  : i32 {
      %c1_i32_9 = arith.constant 1 : i32
      %7 = arith.muli %arg6, %c1_i32_9 : i32
      %c0_i32_10 = arith.constant 0 : i32
      %8 = arith.addi %c0_i32_10, %7 : i32
      %9 = arith.addi %0, %8 : i32
      %10 = arith.index_cast %9 : i32 to index
      %11 = memref.load %arg1[%10] : memref<16xi32, #tpu.memory_space<smem>>
      %c0_i32_11 = arith.constant 0 : i32
      %12 = tpu.memref_slice %arg2[%11, %c0_i32_11] : memref<64x32xf32, #tpu.memory_space<any>> -> memref<1x32xf32, #tpu.memory_space<any>>
      %c0_i32_12 = arith.constant 0 : i32
      %13 = tpu.memref_slice %arg4[%8, %c0_i32_12] : memref<16x32xf32, #tpu.memory_space<vmem>> -> memref<1x32xf32, #tpu.memory_space<vmem>>
      tpu.enqueue_dma source(%12 : memref<1x32xf32, #tpu.memory_space<any>>) target(%13 : memref<1x32xf32, #tpu.memory_space<vmem>>) target_semaphore(%arg5 : memref<!tpu.dma_semaphore, #tpu.memory_space<semaphore_mem>>)
    }
    %c16_i32_1 = arith.constant 16 : i32
    %c0_i32_2 = arith.constant 0 : i32
    %c16_i32_3 = arith.constant 16 : i32
    %2 = arith.addi %c0_i32_2, %c16_i32_3 : i32
    %c1_i32_4 = arith.constant 1 : i32
    scf.for %arg6 = %c0_i32_2 to %2 step %c1_i32_4  : i32 {
      %c1_i32_9 = arith.constant 1 : i32
      %7 = arith.muli %arg6, %c1_i32_9 : i32
      %c0_i32_10 = arith.constant 0 : i32
      %8 = arith.addi %c0_i32_10, %7 : i32
      %c0_i32_11 = arith.constant 0 : i32
      %c0_i32_12 = arith.constant 0 : i32
      %9 = tpu.memref_slice %arg2[%c0_i32_11, %c0_i32_12] : memref<64x32xf32, #tpu.memory_space<any>> -> memref<1x32xf32, #tpu.memory_space<any>>
      %c0_i32_13 = arith.constant 0 : i32
      %10 = tpu.memref_slice %arg4[%8, %c0_i32_13] : memref<16x32xf32, #tpu.memory_space<vmem>> -> memref<1x32xf32, #tpu.memory_space<vmem>>
      tpu.wait_dma2 semaphore(%arg5 : memref<!tpu.dma_semaphore, #tpu.memory_space<semaphore_mem>>) src(%9 : memref<1x32xf32, #tpu.memory_space<any>>) dst(%10 : memref<1x32xf32, #tpu.memory_space<vmem>>)
    }
    %c16_i32_5 = arith.constant 16 : i32
    %c0 = arith.constant 0 : index
    %c0_6 = arith.constant 0 : index
    %3 = vector.load %arg4[%c0, %c0_6] : memref<16x32xf32, #tpu.memory_space<vmem>>, vector<16x32xf32>
    %cst = arith.constant 5.65685415 : f32
    %4 = vector.broadcast %cst : f32 to vector<16x32xf32>
    %5 = arith.mulf %3, %4 : vector<16x32xf32>
    %c0_7 = arith.constant 0 : index
    %c0_8 = arith.constant 0 : index
    %6 = vector.load %arg3[%c0_7, %c0_8] : memref<16x32xf32, #tpu.memory_space<vmem>>, vector<16x32xf32>
    tpu.vector_store %arg3[%c0_7, %c0_8], %5 {strides = array<i32>} : memref<16x32xf32, #tpu.memory_space<vmem>>, vector<16x32xf32>,
    return
  }
  func.func @transform_1(%arg0: i32, %arg1: memref<16xi32, #tpu.memory_space<smem>>) -> (i32, i32) {
    %c0_i32 = arith.constant 0 : i32
    %c0_i32_0 = arith.constant 0 : i32
    return %arg0, %c0_i32 : i32, i32
  }
}

</mosaic_0001>

<bundles_post_ra>
// kernel: tpu_custom_call.1
= control target key start
LH: loop header
LB: loop body
LE: loop exit
PB: predicated region body
PF: predicated region fallthrough
CT: control target
= control target key end

     0   :  { %s243_s0 = inlined_call_operand.vmem [shape: s32[16], index: 0, kind: input, shape index: {}]   ;;  %s244_s1 = inlined_call_operand.vmem [shape: f32[64,32], index: 1, kind: input, shape index: {}]   ;;  %s245_s2 = inlined_call_operand.hbm [shape: f32[16,32], index: 2, kind: output, shape index: {}]  }
   0x1   :  { %s7_s11 = sshll.u32 %s243_s0, 4  ;;  %s8_s11 = int_to_ptr.vmem [resolvable:$true] %s7_s11 }
   0x2   :  { %s150_s12 = scalar_lea.vmem %s8_s11, 16  ;;  %p155_p1 = scmp.lt.s32.totalorder %s8_s11, %s8_s11 }
   0x3   :  { %p151_p0 = scmp.ne.s32.totalorder %s8_s11, %s150_s12  ;;  %p156_p2 = scmp.lt.s32.totalorder %s150_s12, %s150_s12 }
   0x5   :  { %p157_p3 = por %p156_p2, %p155_p1 }
   0x7   :  { %p158_p4 = pnand %p157_p3, %p151_p0 }
   0x9   :  { %161 = shalt.err (!%p158_p4)  }
   0xa   :  { %s206_s13 = smov [#allocation5]  }
   0xb   :  { %10 = dma.vmem_to_smem %s8_s11, 16, %s206_s13, [#allocation4] }
   0xc   :  { %192 = dma.done.wait [#allocation4], 16 }
   0xd   :  { %193 = vsyncadd [#allocation4], 4294967280 }
   0xe   :  { %12 = sfence }
   0xf   :  { %13 = vsyncpa [#allocation7], 0  ;;  %s198_s14 = smov 0  }
  0x10 LB: > { %s22_s15 = sld [smem:[#allocation5 + %s200_s14]]  ;;  %s24_s18 = scalar_lea.vmem [#allocation2], %s200_s14  ;;  %s200_s14 = sphi %s198_s14, %s20_s14  }
  0x16   : > { %s23_s17 = scalar_lea.vmem %s244_s1, %s22_s15 }
  0x17   : > { %v42_v0 = vld [vmem:[%s23_s17] sm:$0x1] }
  0x18   : > { %43 = vst [vmem:[%s24_s18] sm:$0x1] %v42_v0 }
  0x19   : > { %68 = vsyncadd [#allocation3], 16  ;;  %s20_s14 = sadd.s32 1, %s200_s14  }
  0x1a   : > { %p17_p5 = scmp.ge.s32.totalorder %s20_s14, 16  }
  0x1b   :  { %s202_s19 = smov (%p17_p5), 0  }
  0x1c   :  { %19 = sbr.rel (!%p17_p5) target bundleno = 16 (0x10), region = 76 }
  0x23 LB: > { %194 = dma.done.wait [#allocation3], 16  ;;  %s204_s19 = sphi %s202_s19, %s74_s19  }
  0x24   : > { %195 = vsyncadd [#allocation3], 4294967280  ;;  %s74_s19 = sadd.s32 1, %s204_s19  }
  0x25   : > { %p71_p6 = scmp.ge.s32.totalorder %s74_s19, 16  }
  0x26   :  { %v78_v1 = vld [vmem:[#allocation2] sm:$0xff] (%p71_p6)  ;;  %vm82_vm0 = vcmask (%p71_p6), 261120   ;;  %v79_v2 = vld [vmem:[#allocation2 + $0x8] sm:$0xff] (%p71_p6)  ;;  %s207_s20 = smov (%p71_p6), [#allocation6]  }
  0x27   :  { %73 = sbr.rel (!%p71_p6) target bundleno = 35 (0x23), region = 87  ;;  %v80_v3 = vmul.f32 (%p71_p6), 5.656854, %v78_v1  ;;  %v81_v4 = vmul.f32 (%p71_p6), 5.656854, %v79_v2  ;;  %s90_s21 = sshll.u32 (%p71_p6), %s207_s20, 4  ;;  %s91_s21 = int_to_ptr.vmem [resolvable:$true] %s90_s21 }
  0x28   :  { %s162_s1 = scalar_lea.vmem (%p71_p6), %s91_s21, 256  ;;  %p167_p8 = scmp.lt.s32.totalorder (%p71_p6), %s91_s21, %s91_s21 }
  0x29   :  { %83 = vst.msk [vmem:[#allocation6] sm:$0xff] (%p71_p6), %vm82_vm0, %v80_v3  ;;  %84 = vst.msk [vmem:[#allocation6 + $0x8] sm:$0xff] (%p71_p6), %vm82_vm0, %v81_v4  ;;  %p163_p7 = scmp.ne.s32.totalorder (%p71_p6), %s91_s21, %s162_s1  ;;  %p168_p9 = scmp.lt.s32.totalorder (%p71_p6), %s162_s1, %s162_s1 }
  0x2b   :  { %p169_p10 = por (%p71_p6), %p168_p9, %p167_p8 }
  0x2d   :  { %p170_p11 = pnand (%p71_p6), %p169_p10, %p163_p7 }
  0x2f   :  { %173 = shalt.err (!%p170_p11)
}
  0x30   :  { %s174_s24 = scalar_lea.hbm %s245_s2, 256 }
  0x31   :  { %p175_p12 = scmp.ne.s32.totalorder %s245_s2, %s174_s24  ;;  %p178_p13 = scmp.lt.u32.totalorder %s174_s24, %s245_s2 }
  0x33   :  { %p180_p0 = pnand %p178_p13, %p175_p12 }
  0x35   :  { %183 = shalt.err (!%p180_p0)
}
  0x36   :  { %s208_s29 = smov 128   ;;  %s209_s30 = smov 8  }
  0x37   :  { %96 = dma.vmem_to_hbm [thread:$0]  %s91_s21, 256, %s245_s2, [#allocation7], %s208_s29, %s208_s29, %s209_s30  }
  0x38   :  { %196 = dma.done.wait [#allocation7], 256  }
  0x39   :  { %197 = vsyncadd [#allocation7], 4294967040 }
  0x3a   :  { %100 = vsyncpa [#allocation7], 1 }
  0x3b   :  { %101 = vsyncmov [#allocation3] }
  0x3e   :  { %s102_s5 = vpop.sfrf %101 }
  0x3f   :  { %p129_p1 = scmp.ne.s32.totalorder %s102_s5, 0 }
  0x41   :  { %106 = shalt.err (%p129_p1)  }

</bundles_post_ra>
